<compile_context>
chip_gen: v6e
topology: v6e:2x2x1
jax: 0.10.0
libtpu: 0.0.40
codegen_flags: <defaults>
</compile_context>

<pallas_src>
import functools

import jax
import jax.numpy as jnp
import numpy as np
from jax.experimental import pallas as pl

ENSEMBLE_SIZE = 5
INPUT_DIM = 32
OUTPUT_DIM = 8                 # network emits 2*OUTPUT_DIM (mean, logvar)
ARCH = (32, 32, 32, 32)        # hidden sizes (same structure as (200,)*4, kept small)
BATCH = 8


# ---------------------------------------------------------------------------
# Pallas kernel: one invocation; every layer is ONE wide matmul covering all
# ensemble members (block-diagonal weights).  All data lives in VMEM.
# ---------------------------------------------------------------------------
def _ensemble_mlp_kernel(*refs, num_hidden):
    x_ref, mu_ref, isig_ref = refs[:3]
    layer_refs = refs[3:3 + 2 * num_hidden]                     # w0, b0, w1, b1, ...
    (wm_ref, bm_ref, wl_ref, bl_ref,
     maxlv_ref, minlv_ref) = refs[3 + 2 * num_hidden:3 + 2 * num_hidden + 6]
    mean_ref, logvar_ref = refs[-2:]

    # Input normalization: computed once, shared by every ensemble member.
    h = (x_ref[...] - mu_ref[...]) * isig_ref[...]              # (B, Din)

    # Hidden layers: layer 0 is (Din, E*H); later layers are block-diagonal
    # (E*H, E*H).  One MXU matmul + one wide ReLU per layer for all members.
    for l in range(num_hidden):
        w = layer_refs[2 * l][...]
        b = layer_refs[2 * l + 1][...]
        h = jnp.maximum(
            jnp.dot(h, w, preferred_element_type=jnp.float32) + b, 0.0)

    # Separate mean / logvar heads (block-diagonal): lane-dense outputs.
    mean = jnp.dot(h, wm_ref[...], preferred_element_type=jnp.float32) + bm_ref[...]
    logvar = jnp.dot(h, wl_ref[...], preferred_element_type=jnp.float32) + bl_ref[...]

    max_lv = maxlv_ref[...]                                     # (1, E*half), tiled
    min_lv = minlv_ref[...]
    logvar = max_lv - jax.nn.softplus(max_lv - logvar)
    logvar = min_lv + jax.nn.softplus(logvar - min_lv)

    mean_ref[...] = mean                                        # (B, E*half)
    logvar_ref[...] = logvar


# ---------------------------------------------------------------------------
# Parameter repacking helpers (wrapper-side layout plumbing)
# ---------------------------------------------------------------------------
def _block_diag(W):
    """(E, din, dout) -> block-diagonal (E*din, E*dout)."""
    E, din, dout = W.shape
    eye = jnp.eye(E, dtype=W.dtype)
    bd = jnp.einsum('ef,eio->eifo', eye, W)                     # (E, din, E, dout)
    return bd.reshape(E * din, E * dout)


def _pack_bias(b):
    """(E, 1, dout) -> (1, E*dout), member-major column grouping."""
    E, _, dout = b.shape
    return b.reshape(1, E * dout)


# ---------------------------------------------------------------------------
# Wrapper
# ---------------------------------------------------------------------------
def probabilistic_ensemble_forward(x, mu, sigma, Ws, bs, max_lv, min_lv):
    """x: (B, input_dim).  Returns (mean, logvar), each of shape (E, B, output_dim)."""
    E = Ws[0].shape[0]
    B = x.shape[0]
    half = Ws[-1].shape[-1] // 2
    num_hidden = len(Ws) - 1

    # Hoisted normalization scale; guard against unfitted sigma==0
    # (mirrors fit_input_stats' sigma[sigma < 1e-12] = 1.0).
    inv_sigma = 1.0 / jnp.where(sigma < 1e-12, 1.0, sigma)

    # --- pack per-member weights into wide / block-diagonal matrices ---------
    packed = []
    din0, h0 = Ws[0].shape[1], Ws[0].shape[2]
    # Layer 0: shared input -> just stack member columns horizontally.
    W0 = jnp.transpose(Ws[0], (1, 0, 2)).reshape(din0, E * h0)   # (Din, E*H0)
    packed += [W0, _pack_bias(bs[0])]
    # Remaining hidden layers: block-diagonal.
    for W, b in zip(Ws[1:-1], bs[1:-1]):
        packed += [_block_diag(W), _pack_bias(b)]

    # Final layer split into mean / logvar heads (static slicing), block-diag.
    W_mean, W_logv = Ws[-1][..., :half], Ws[-1][..., half:]
    b_mean, b_logv = bs[-1][..., :half], bs[-1][..., half:]
    packed += [_block_diag(W_mean), _pack_bias(b_mean),
               _block_diag(W_logv), _pack_bias(b_logv)]

    # max/min logvar are shared across members -> tile along lanes once.
    maxlv_t = jnp.tile(max_lv, (1, E))                           # (1, E*half)
    minlv_t = jnp.tile(min_lv, (1, E))

    args = [x, mu, inv_sigma] + packed + [maxlv_t, minlv_t]

    kernel = functools.partial(_ensemble_mlp_kernel, num_hidden=num_hidden)
    out_shape = (jax.ShapeDtypeStruct((B, E * half), jnp.float32),
                 jax.ShapeDtypeStruct((B, E * half), jnp.float32))

    # Grid-less pallas_call: every array is mapped whole into VMEM (a few
    # hundred KB f32 total - fits easily on v5e/v6e/v7x).
    mean_flat, logvar_flat = pl.pallas_call(kernel, out_shape=out_shape)(*args)

    # (B, E*half) -> (E, B, half): trivial wrapper-side layout plumbing.
    mean = mean_flat.reshape(B, E, half).transpose(1, 0, 2)
    logvar = logvar_flat.reshape(B, E, half).transpose(1, 0, 2)
    return mean, logvar


# ---------------------------------------------------------------------------
# Deterministic parameter initialization (mirrors __init__ shapes/init scheme)
# ---------------------------------------------------------------------------
def init_params(key):
    gain = float(np.sqrt(2.0))   # calculate_gain('relu')
    dims = (INPUT_DIM,) + ARCH + (2 * OUTPUT_DIM,)
    Ws, bs = [], []
    for i in range(len(dims) - 1):
        key, sub = jax.random.split(key)
        din, dout = dims[i], dims[i + 1]
        # torch xavier_uniform_ on a 3D (E, din, dout) tensor:
        #   fan_in = din * dout, fan_out = E * dout
        fan_in, fan_out = din * dout, ENSEMBLE_SIZE * dout
        bound = gain * np.sqrt(6.0 / (fan_in + fan_out))
        W = jax.random.uniform(sub, (ENSEMBLE_SIZE, din, dout),
                               minval=-bound, maxval=bound, dtype=jnp.float32)
        b = jnp.zeros((ENSEMBLE_SIZE, 1, dout), jnp.float32)
        Ws.append(W)
        bs.append(b)

    # inputs_mu / inputs_sigma: module initializes both to zeros (sigma=0 would
    # divide by zero before fit_input_stats); use mu=0, sigma=1 as fitted stats.
    mu = jnp.zeros((1, INPUT_DIM), jnp.float32)
    sigma = jnp.ones((1, INPUT_DIM), jnp.float32)
    max_lv = jnp.ones((1, OUTPUT_DIM), jnp.float32) / 2.0
    min_lv = -jnp.ones((1, OUTPUT_DIM), jnp.float32) * 10.0
    return mu, sigma, Ws, bs, max_lv, min_lv


# ---------------------------------------------------------------------------
# Pure-JAX reference (mirrors the PyTorch forward for dim == 2 inputs)
# ---------------------------------------------------------------------------
def reference_forward(x, mu, sigma, Ws, bs, max_lv, min_lv):
    h = (x - mu) / jnp.where(sigma < 1e-12, 1.0, sigma)
    h = jnp.broadcast_to(h[None], (ENSEMBLE_SIZE,) + h.shape)
    for W, b in zip(Ws[:-1], bs[:-1]):
        h = jnp.maximum(h @ W + b, 0.0)
    out = h @ Ws[-1] + bs[-1]
    half = out.shape[-1] // 2
    mean, logvar = out[..., :half], out[..., half:]
    logvar = max_lv - jax.nn.softplus(max_lv - logvar)
    logvar = min_lv + jax.nn.softplus(logvar - min_lv)
    return mean, logvar


if __name__ == "__main__":
    key = jax.random.PRNGKey(0)
    key, pkey, xkey = jax.random.split(key, 3)
    mu, sigma, Ws, bs, max_lv, min_lv = init_params(pkey)
    x = jax.random.normal(xkey, (BATCH, INPUT_DIM), dtype=jnp.float32)

    mean, logvar = probabilistic_ensemble_forward(x, mu, sigma, Ws, bs, max_lv, min_lv)
    mean, logvar = jax.block_until_ready((mean, logvar))

    ref_mean, ref_logvar = reference_forward(x, mu, sigma, Ws, bs, max_lv, min_lv)
    np.testing.assert_allclose(np.asarray(mean), np.asarray(ref_mean), rtol=1e-5, atol=1e-5)
    np.testing.assert_allclose(np.asarray(logvar), np.asarray(ref_logvar), rtol=1e-5, atol=1e-5)

    # stochastic (deterministic=False) sampling path - glue outside the kernel:
    # TODO(synk): torch.randn-based sampling has no in-kernel equivalent needed;
    # done with jax.random here.
    samples = mean + jnp.exp(0.5 * logvar) * jax.random.normal(key, mean.shape)
    jax.block_until_ready(samples)

    print("KERNEL_OK")
</pallas_src>

<mosaic_0001>
module attributes {stable_mosaic.version = 11 : i64} {
  func.func @_ensemble_mlp_kernel(%arg0: memref<8x32xf32, #tpu.memory_space<vmem>>, %arg1: memref<1x32xf32, #tpu.memory_space<vmem>>, %arg2: memref<1x32xf32, #tpu.memory_space<vmem>>, %arg3: memref<32x160xf32, #tpu.memory_space<vmem>>, %arg4: memref<1x160xf32, #tpu.memory_space<vmem>>, %arg5: memref<160x160xf32, #tpu.memory_space<vmem>>, %arg6: memref<1x160xf32, #tpu.memory_space<vmem>>, %arg7: memref<160x160xf32, #tpu.memory_space<vmem>>, %arg8: memref<1x160xf32, #tpu.memory_space<vmem>>, %arg9: memref<160x160xf32, #tpu.memory_space<vmem>>, %arg10: memref<1x160xf32, #tpu.memory_space<vmem>>, %arg11: memref<160x40xf32, #tpu.memory_space<vmem>>, %arg12: memref<1x40xf32, #tpu.memory_space<vmem>>, %arg13: memref<160x40xf32, #tpu.memory_space<vmem>>, %arg14: memref<1x40xf32, #tpu.memory_space<vmem>>, %arg15: memref<1x40xf32, #tpu.memory_space<vmem>>, %arg16: memref<1x40xf32, #tpu.memory_space<vmem>>, %arg17: memref<8x40xf32, #tpu.memory_space<vmem>>, %arg18: memref<8x40xf32, #tpu.memory_space<vmem>>) attributes {dimension_semantics = [], scalar_prefetch = 0 : i64, scratch_operands = 0 : i64, tpu.core_type = #tpu.core_type<tc>} {
    %c0 = arith.constant 0 : index
    %c0_0 = arith.constant 0 : index
    %0 = vector.load %arg0[%c0, %c0_0] : memref<8x32xf32, #tpu.memory_space<vmem>>, vector<8x32xf32>
    %c0_1 = arith.constant 0 : index
    %c0_2 = arith.constant 0 : index
    %1 = vector.load %arg1[%c0_1, %c0_2] : memref<1x32xf32, #tpu.memory_space<vmem>>, vector<1x32xf32>
    %2 = vector.broadcast %1 : vector<1x32xf32> to vector<8x32xf32>
    %3 = arith.subf %0, %2 : vector<8x32xf32>
    %c0_3 = arith.constant 0 : index
    %c0_4 = arith.constant 0 : index
    %4 = vector.load %arg2[%c0_3, %c0_4] : memref<1x32xf32, #tpu.memory_space<vmem>>, vector<1x32xf32>
    %5 = vector.broadcast %4 : vector<1x32xf32> to vector<8x32xf32>
    %6 = arith.mulf %3, %5 : vector<8x32xf32>
    %c0_5 = arith.constant 0 : index
    %c0_6 = arith.constant 0 : index
    %7 = vector.load %arg3[%c0_5, %c0_6] : memref<32x160xf32, #tpu.memory_space<vmem>>, vector<32x160xf32>
    %c0_7 = arith.constant 0 : index
    %c0_8 = arith.constant 0 : index
    %8 = vector.load %arg4[%c0_7, %c0_8] : memref<1x160xf32, #tpu.memory_space<vmem>>, vector<1x160xf32>
    %cst = arith.constant dense<0.000000e+00> : vector<8x160xf32>
    %9 = tpu.matmul %6, %7, %cst {dimension_numbers = #tpu.dot_dimension_numbers<[1], [0], [0], [1], [0, 0, 1, 1], [], []>} : vector<8x32xf32>, vector<32x160xf32>, vector<8x160xf32> -> vector<8x160xf32>
    %10 = vector.broadcast %8 : vector<1x160xf32> to vector<8x160xf32>
    %11 = arith.addf %9, %10 : vector<8x160xf32>
    %cst_9 = arith.constant 0.000000e+00 : f32
    %12 = vector.broadcast %cst_9 : f32 to vector<8x160xf32>
    %13 = arith.maximumf %11, %12 : vector<8x160xf32>
    %c0_10 = arith.constant 0 : index
    %c0_11 = arith.constant 0 : index
    %14 = vector.load %arg5[%c0_10, %c0_11] : memref<160x160xf32, #tpu.memory_space<vmem>>, vector<160x160xf32>
    %c0_12 = arith.constant 0 : index
    %c0_13 = arith.constant 0 : index
    %15 = vector.load %arg6[%c0_12, %c0_13] : memref<1x160xf32, #tpu.memory_space<vmem>>, vector<1x160xf32>
    %cst_14 = arith.constant dense<0.000000e+00> : vector<8x160xf32>
    %16 = tpu.matmul %13, %14, %cst_14 {dimension_numbers = #tpu.dot_dimension_numbers<[1], [0], [0], [1], [0, 0, 1, 1], [], []>} : vector<8x160xf32>, vector<160x160xf32>, vector<8x160xf32> -> vector<8x160xf32>
    %17 = vector.broadcast %15 : vector<1x160xf32> to vector<8x160xf32>
    %18 = arith.addf %16, %17 : vector<8x160xf32>
    %cst_15 = arith.constant 0.000000e+00 : f32
    %19 = vector.broadcast %cst_15 : f32 to vector<8x160xf32>
    %20 = arith.maximumf %18, %19 : vector<8x160xf32>
    %c0_16 = arith.constant 0 : index
    %c0_17 = arith.constant 0 : index
    %21 = vector.load %arg7[%c0_16, %c0_17] : memref<160x160xf32, #tpu.memory_space<vmem>>, vector<160x160xf32>
    %c0_18 = arith.constant 0 : index
    %c0_19 = arith.constant 0 : index
    %22 = vector.load %arg8[%c0_18, %c0_19] : memref<1x160xf32, #tpu.memory_space<vmem>>, vector<1x160xf32>
    %cst_20 = arith.constant dense<0.000000e+00> : vector<8x160xf32>
    %23 = tpu.matmul %20, %21, %cst_20 {dimension_numbers = #tpu.dot_dimension_numbers<[1], [0], [0], [1], [0, 0, 1, 1], [], []>} : vector<8x160xf32>, vector<160x160xf32>, vector<8x160xf32> -> vector<8x160xf32>
    %24 = vector.broadcast %22 : vector<1x160xf32> to vector<8x160xf32>
    %25 = arith.addf %23, %24 : vector<8x160xf32>
    %cst_21 = arith.constant 0.000000e+00 : f32
    %26 = vector.broadcast %cst_21 : f32 to vector<8x160xf32>
    %27 = arith.maximumf %25, %26 : vector<8x160xf32>
    %c0_22 = arith.constant 0 : index
    %c0_23 = arith.constant 0 : index
    %28 = vector.load %arg9[%c0_22, %c0_23] : memref<160x160xf32, #tpu.memory_space<vmem>>, vector<160x160xf32>
    %c0_24 = arith.constant 0 : index
    %c0_25 = arith.constant 0 : index
    %29 = vector.load %arg10[%c0_24, %c0_25] : memref<1x160xf32, #tpu.memory_space<vmem>>, vector<1x160xf32>
    %cst_26 = arith.constant dense<0.000000e+00> : vector<8x160xf32>
    %30 = tpu.matmul %27, %28, %cst_26 {dimension_numbers = #tpu.dot_dimension_numbers<[1], [0], [0], [1], [0, 0, 1, 1], [], []>} : vector<8x160xf32>, vector<160x160xf32>, vector<8x160xf32> -> vector<8x160xf32>
    %31 = vector.broadcast %29 : vector<1x160xf32> to vector<8x160xf32>
    %32 = arith.addf %30, %31 : vector<8x160xf32>
    %cst_27 = arith.constant 0.000000e+00 : f32
    %33 = vector.broadcast %cst_27 : f32 to vector<8x160xf32>
    %34 = arith.maximumf %32, %33 : vector<8x160xf32>
    %c0_28 = arith.constant 0 : index
    %c0_29 = arith.constant 0 : index
    %35 = vector.load %arg11[%c0_28, %c0_29] : memref<160x40xf32, #tpu.memory_space<vmem>>, vector<160x40xf32>
    %cst_30 = arith.constant dense<0.000000e+00> : vector<8x40xf32>
    %36 = tpu.matmul %34, %35, %cst_30 {dimension_numbers = #tpu.dot_dimension_numbers<[1], [0], [0], [1], [0, 0, 1, 1], [], []>} : vector<8x160xf32>, vector<160x40xf32>, vector<8x40xf32> -> vector<8x40xf32>
    %c0_31 = arith.constant 0 : index
    %c0_32 = arith.constant 0 : index
    %37 = vector.load %arg12[%c0_31, %c0_32] : memref<1x40xf32, #tpu.memory_space<vmem>>, vector<1x40xf32>
    %38 = vector.broadcast %37 : vector<1x40xf32> to vector<8x40xf32>
    %39 = arith.addf %36, %38 : vector<8x40xf32>
    %c0_33 = arith.constant 0 : index
    %c0_34 = arith.constant 0 : index
    %40 = vector.load %arg13[%c0_33, %c0_34] : memref<160x40xf32, #tpu.memory_space<vmem>>, vector<160x40xf32>
    %cst_35 = arith.constant dense<0.000000e+00> : vector<8x40xf32>
    %41 = tpu.matmul %34, %40, %cst_35 {dimension_numbers = #tpu.dot_dimension_numbers<[1], [0], [0], [1], [0, 0, 1, 1], [], []>} : vector<8x160xf32>, vector<160x40xf32>, vector<8x40xf32> -> vector<8x40xf32>
    %c0_36 = arith.constant 0 : index
    %c0_37 = arith.constant 0 : index
    %42 = vector.load %arg14[%c0_36, %c0_37] : memref<1x40xf32, #tpu.memory_space<vmem>>, vector<1x40xf32>
    %43 = vector.broadcast %42 : vector<1x40xf32> to vector<8x40xf32>
    %44 = arith.addf %41, %43 : vector<8x40xf32>
    %c0_38 = arith.constant 0 : index
    %c0_39 = arith.constant 0 : index
    %45 = vector.load %arg15[%c0_38, %c0_39] : memref<1x40xf32, #tpu.memory_space<vmem>>, vector<1x40xf32>
    %c0_40 = arith.constant 0 : index
    %c0_41 = arith.constant 0 : index
    %46 = vector.load %arg16[%c0_40, %c0_41] : memref<1x40xf32, #tpu.memory_space<vmem>>, vector<1x40xf32>
    %47 = vector.broadcast %45 : vector<1x40xf32> to vector<8x40xf32>
    %48 = arith.subf %47, %44 : vector<8x40xf32>
    %cst_42 = arith.constant 0.000000e+00 : f32
    %49 = vector.broadcast %cst_42 : f32 to vector<8x40xf32>
    %50 = arith.maximumf %48, %49 : vector<8x40xf32>
    %51 = vector.broadcast %cst_42 : f32 to vector<8x40xf32>
    %52 = arith.subf %48, %51 : vector<8x40xf32>
    %53 = arith.cmpf one, %52, %52 : vector<8x40xf32>
    %54 = vector.broadcast %cst_42 : f32 to vector<8x40xf32>
    %55 = arith.addf %48, %54 : vector<8x40xf32>
    %56 = math.absf %52 : vector<8x40xf32>
    %cst_43 = arith.constant 0.000000e+00 : f32
    %57 = vector.broadcast %cst_43 : f32 to vector<8x40xf32>
    %58 = arith.subf %57, %56 : vector<8x40xf32>
    %59 = math.exp %58 : vector<8x40xf32>
    %60 = math.log1p %59 : vector<8x40xf32>
    %61 = arith.addf %50, %60 : vector<8x40xf32>
    %62 = arith.select %53, %55, %61 : vector<8x40xi1>, vector<8x40xf32>
    %63 = vector.broadcast %45 : vector<1x40xf32> to vector<8x40xf32>
    %64 = arith.subf %63, %62 : vector<8x40xf32>
    %65 = vector.broadcast %46 : vector<1x40xf32> to vector<8x40xf32>
    %66 = arith.subf %64, %65 : vector<8x40xf32>
    %cst_44 = arith.constant 0.000000e+00 : f32
    %67 = vector.broadcast %cst_44 : f32 to vector<8x40xf32>
    %68 = arith.maximumf %66, %67 : vector<8x40xf32>
    %69 = vector.broadcast %cst_44 : f32 to vector<8x40xf32>
    %70 = arith.subf %66, %69 : vector<8x40xf32>
    %71 = arith.cmpf one, %70, %70 : vector<8x40xf32>
    %72 = vector.broadcast %cst_44 : f32 to vector<8x40xf32>
    %73 = arith.addf %66, %72 : vector<8x40xf32>
    %74 = math.absf %70 : vector<8x40xf32>
    %cst_45 = arith.constant 0.000000e+00 : f32
    %75 = vector.broadcast %cst_45 : f32 to vector<8x40xf32>
    %76 = arith.subf %75, %74 : vector<8x40xf32>
    %77 = math.exp %76 : vector<8x40xf32>
    %78 = math.log1p %77 : vector<8x40xf32>
    %79 = arith.addf %68, %78 : vector<8x40xf32>
    %80 = arith.select %71, %73, %79 : vector<8x40xi1>, vector<8x40xf32>
    %81 = vector.broadcast %46 : vector<1x40xf32> to vector<8x40xf32>
    %82 = arith.addf %81, %80 : vector<8x40xf32>
    %c0_46 = arith.constant 0 : index
    %c0_47 = arith.constant 0 : index
    %83 = vector.load %arg17[%c0_46, %c0_47] : memref<8x40xf32, #tpu.memory_space<vmem>>, vector<8x40xf32>
    tpu.vector_store %arg17[%c0_46, %c0_47], %39 {strides = array<i32>} : memref<8x40xf32, #tpu.memory_space<vmem>>, vector<8x40xf32>,
    %c0_48 = arith.constant 0 : index
    %c0_49 = arith.constant 0 : index
    %84 = vector.load %arg18[%c0_48, %c0_49] : memref<8x40xf32, #tpu.memory_space<vmem>>, vector<8x40xf32>
    tpu.vector_store %arg18[%c0_48, %c0_49], %82 {strides = array<i32>} : memref<8x40xf32, #tpu.memory_space<vmem>>, vector<8x40xf32>,
    return
  }
}

</mosaic_0001>

<bundles_post_ra>
// kernel: tpu_custom_call.1
= control target key start
LH: loop header
LB: loop body
LE: loop exit
PB: predicated region body
PF: predicated region fallthrough
CT: control target
= control target key end

     0   :  { %s1457_s0 = inlined_call_operand.vmem [shape: f32[8,32], index: 0, kind: input, shape index: {}]   ;;  %s1458_s1 = inlined_call_operand.vmem [shape: f32[1,32], index: 1, kind: input, shape index: {}]   ;;  %s1459_s2 = inlined_call_operand.vmem [shape: f32[1,32], index: 2, kind: input, shape index: {}]   ;;  %s1460_s3 = inlined_call_operand.vmem [shape: f32[32,160], index: 3, kind: input, shape index: {}]   ;;  %s1461_s4 = inlined_call_operand.vmem [shape: f32[1,160], index: 4, kind: input, shape index: {}]   ;;  %s1462_s5 = inlined_call_operand.vmem [shape: f32[160,160], index: 5, kind: input, shape index: {}]   ;;  %s1463_s6 = inlined_call_operand.vmem [shape: f32[1,160], index: 6, kind: input, shape index: {}]   ;;  %s1464_s7 = inlined_call_operand.hbm [shape: f32[160,160], index: 7, kind: input, shape index: {}]   ;;  %s1465_s8 = inlined_call_operand.vmem [shape: f32[1,160], index: 8, kind: input, shape index: {}]   ;;  %s1466_s9 = inlined_call_operand.hbm [shape: f32[160,160], index: 9, kind: input, shape index: {}]   ;;  %s1467_s10 = inlined_call_operand.vmem [shape: f32[1,160], index: 10, kind: input, shape index: {}]   ;;  %s1468_s11 = inlined_call_operand.vmem [shape: f32[160,40], index: 11, kind: input, shape index: {}]   ;;  %s1469_s12 = inlined_call_operand.vmem [shape: f32[1,40], index: 12, kind: input, shape index: {}]   ;;  %s1470_s13 = inlined_call_operand.vmem [shape: f32[160,40], index: 13, kind: input, shape index: {}]   ;;  %s1471_s14 = inlined_call_operand.vmem [shape: f32[1,40], index: 14, kind: input, shape index: {}]   ;;  %s1472_s15 = inlined_call_operand.vmem [shape: f32[1,40], index: 15, kind: input, shape index: {}]   ;;  %s1473_s16 = inlined_call_operand.vmem [shape: f32[1,40], index: 16, kind: input, shape index: {}]   ;;  %s1474_s17 = inlined_call_operand.hbm [shape: f32[8,40], index: 17, kind: output, shape index: {0}]   ;;  %s1475_s18 = inlined_call_operand.hbm [shape: f32[8,40], index: 18, kind: output, shape index: {1}]  }
   0x1   :  { %1476 = sst [smem:[#allocation14_spill]] %s1457_s0 }
   0x2   :  { %1477 = sst [smem:[#allocation15_spill]] %s1458_s1 }
   0x3   :  { %1478 = sst [smem:[#allocation16_spill]] %s1459_s2 }
   0x4   :  { %24 = vsyncpa [#allocation3], 0 }
   0x5   :  { %25 = vsyncpa [#allocation6], 0 }
   0x6   :  { %26 = vsyncpa [#allocation4], 0 }
   0x7   :  { %27 = vsyncpa [#allocation9], 0  ;;  %s985_s27 = smov [#allocation2]  }
   0x8   :  { %s47_s28 = sshll.u32 %s985_s27, 4  ;;  %s48_s28 = int_to_ptr.vmem [resolvable:$true] %s47_s28 }
   0x9   :  { %s905_s29 = scalar_lea.vmem %s48_s28, 5120  ;;  %p910_p1 = scmp.lt.s32.totalorder %s48_s28, %s48_s28 }
   0xa   :  { %p906_p0 = scmp.ne.s32.totalorder %s48_s28, %s905_s29  ;;  %p911_p2 = scmp.lt.s32.totalorder %s905_s29, %s905_s29 }
   0xc   :  { %p912_p3 = por %p911_p2, %p910_p1 }
   0xe   :  { %p913_p4 = pnand %p912_p3, %p906_p0 }
  0x10   :  { %916 = shalt.err (!%p913_p4)
}
  0x11   :  { %s986_s30 = smov 256   ;;  %s987_s0 = smov 16  }
  0x12   :  { %53 = dma.hbm_to_vmem [thread:$0]  %s1464_s7, 5120, %s48_s28, [#allocation3], %s986_s30, %s986_s30, %s987_s0  }
  0x13   :  { %s988_s20 = smov [#allocation5]  }
  0x14   :  { %s61_s21 = sshll.u32 %s988_s20, 4  ;;  %s62_s21 = int_to_ptr.vmem [resolvable:$true] %s61_s21 }
  0x15   :  { %s925_s22 = scalar_lea.vmem %s62_s21, 5120  ;;  %p930_p6 = scmp.lt.s32.totalorder %s62_s21, %s62_s21 }
  0x16   :  { %p926_p5 = scmp.ne.s32.totalorder %s62_s21, %s925_s22  ;;  %p931_p7 = scmp.lt.s32.totalorder %s925_s22, %s925_s22 }
  0x18   :  { %p932_p8 = por %p931_p7, %p930_p6 }
  0x1a   :  { %p933_p9 = pnand %p932_p8, %p926_p5 }
  0x1c   :  { %936 = shalt.err (!%p933_p9)
}
  0x1d   :  { %67 = dma.hbm_to_vmem [thread:$0]  %s1466_s9, 5120, %s62_s21, [#allocation6], %s986_s30, %s986_s30, %s987_s0  }
  0x1e   :  { %977 = dma.done.wait [#allocation3], 5120  }
  0x1f   :  { %978 = vsyncadd [#allocation3], 4294962176 }
  0x20   :  { %979 = dma.done.wait [#allocation6], 5120  }
  0x21   :  { %980 = vsyncadd [#allocation6], 4294962176  ;;  %v989_v0 = vmov 0.0   ;;  %v112_v1 = vld [vmem:[%s1460_s3 + $0x38] sm:$0xff]  ;;  %v111_v2 = vld [vmem:[%s1460_s3 + $0x30] sm:$0xff]  ;;  %s1479_s23 = sld [smem:[#allocation14_spill]] }
  0x22   :  { %193 = vmatprep.mubr.f32.mxu0 %v989_v0  ;;  %v110_v3 = vld [vmem:[%s1460_s3 + $0x28] sm:$0xff]  ;;  %153 = vmatprep.subr.mxu0 %v112_v1  ;;  %v109_v4 = vld [vmem:[%s1460_s3 + $0x20] sm:$0xff]  ;;  %v108_v5 = vld [vmem:[%s1460_s3 + $0x18] sm:$0xff]  ;;  %s1480_s25 = sld [smem:[#allocation15_spill]]  ;;  %vm125_vm0 = vcmask 261120   ;;  %vm837_vm1 = vcmask 326656  }
  0x23   :  { %154 = vmatpush1.msra.mxu0 %v111_v2  ;;  %v107_v6 = vld [vmem:[%s1460_s3 + $0x10] sm:$0xff]  ;;  %v106_v7 = vld [vmem:[%s1460_s3 + $0x8] sm:$0xff]  ;;  %s1481_s28 = sld [smem:[#allocation16_spill]]  ;;  %v233_v11 = vld [vmem:[%s1462_s5 + $0xf8] sm:$0xff] }
  0x24   :  { %155 = vmatprep.subr.mxu0 %v110_v3  ;;  %257 = vmatprep.subr.mxu1 %v233_v11  ;;  %v232_v13 = vld [vmem:[%s1462_s5 + $0xf0] sm:$0xff]  ;;  %v231_v14 = vld [vmem:[%s1462_s5 + $0xe8] sm:$0xff]  ;;  %v230_v15 = vld [vmem:[%s1462_s5 + $0xe0] sm:$0xff] }
  0x25   :  { %156 = vmatpush1.msra.mxu0 %v109_v4  ;;  %v105_v16 = vld [vmem:[%s1460_s3] sm:$0xff]  ;;  %258 = vmatpush1.msra.mxu1 %v232_v13  ;;  %v229_v17 = vld [vmem:[%s1462_s5 + $0xd8] sm:$0xff]  ;;  %v228_v19 = vld [vmem:[%s1462_s5 + $0xd0] sm:$0xff] }
  0x26   :  { %157 = vmatprep.subr.mxu0 %v108_v5  ;;  %259 = vmatprep.subr.mxu1 %v231_v14  ;;  %v227_v20 = vld [vmem:[%s1462_s5 + $0xc8] sm:$0xff]  ;;  %v226_v21 = vld [vmem:[%s1462_s5 + $0xc0] sm:$0xff]  ;;  %v225_v22 = vld [vmem:[%s1462_s5 + $0xb8] sm:$0xff] }
  0x27   :  { %v88_v8 = vld [vmem:[%s1479_s23] sm:$0xff]  ;;  %158 = vmatpush1.msra.mxu0 %v107_v6  ;;  %260 = vmatpush1.msra.mxu1 %v230_v15  ;;  %v224_v23 = vld [vmem:[%s1462_s5 + $0xb0] sm:$0xff]  ;;  %v223_v24 = vld [vmem:[%s1462_s5 + $0xa8] sm:$0xff] }
  0x28   :  { %v870_v9 = vld [vmem:[%s1480_s25] ss:$0 sm:$0xff]  ;;  %159 = vmatprep.subr.mxu0 %v106_v7  ;;  %261 = vmatprep.subr.mxu1 %v229_v17  ;;  %v221_v26 = vld [vmem:[%s1462_s5 + $0x98] sm:$0xff]  ;;  %v220_v27 = vld [vmem:[%s1462_s5 + $0x90] sm:$0xff] }
  0x29   :  { %v871_v10 = vld [vmem:[%s1481_s28] ss:$0 sm:$0xff]  ;;  %v96_v12 = vsub.f32 %v88_v8, %v870_v9  ;;  %160 = vmatpush1.msra.mxu0 %v105_v16  ;;  %262 = vmatpush1.msra.mxu1 %v228_v19  ;;  %v219_v28 = vld [vmem:[%s1462_s5 + $0x88] sm:$0xff]  ;;  %v217_v30 = vld [vmem:[%s1462_s5 + $0x78] sm:$0xff] }
  0x2a   :  { %263 = vmatprep.subr.mxu1 %v227_v20  ;;  %v222_v25 = vld [vmem:[%s1462_s5 + $0xa0] sm:$0xff]  ;;  %v216_v31 = vld [vmem:[%s1462_s5 + $0x70] sm:$0xff]  ;;  %v215_v32 = vld [vmem:[%s1462_s5 + $0x68] sm:$0xff] }
  0x2b   :  { %v104_v18 = vmul.f32 %v871_v10, %v96_v12  ;;  %264 = vmatpush1.msra.mxu1 %v226_v21  ;;  %v218_v29 = vld [vmem:[%s1462_s5 + $0x80] sm:$0xff]  ;;  %v213_v34 = vld [vmem:[%s1462_s5 + $0x58] sm:$0xff]  ;;  %v212_v35 = vld [vmem:[%s1462_s5 + $0x50] sm:$0xff] }
  0x2c   :  { %265 = vmatprep.subr.mxu1 %v225_v22  ;;  %v214_v33 = vld [vmem:[%s1462_s5 + $0x60] sm:$0xff]  ;;  %v211_v36 = vld [vmem:[%s1462_s5 + $0x48] sm:$0xff]  ;;  %v209_v38 = vld [vmem:[%s1462_s5 + $0x38] sm:$0xff] }
  0x2d   :  { %872 = vmatmul.mubr.msk.f32.vlgmr.msra.gmra.mxu0 %vm125_vm0, %v104_v18  ;;  %266 = vmatpush1.msra.mxu1 %v224_v23  ;;  %v210_v37 = vld [vmem:[%s1462_s5 + $0x40] sm:$0xff]  ;;  %v208_v39 = vld [vmem:[%s1462_s5 + $0x30] sm:$0xff]  ;;  %v207_v40 = vld [vmem:[%s1462_s5 + $0x28] sm:$0xff]  ;;  %v115_v23 = vlaneseq }
  0x2e   :  { %267 = vmatprep.subr.mxu1 %v223_v24  ;;  %v206_v41 = vld [vmem:[%s1462_s5 + $0x20] sm:$0xff]  ;;  %v205_v42 = vld [vmem:[%s1462_s5 + $0x18] sm:$0xff]  ;;  %v204_v43 = vld [vmem:[%s1462_s5 + $0x10] sm:$0xff] }
  0x2f   :  { %268 = vmatpush1.msra.mxu1 %v222_v25  ;;  %v203_v44 = vld [vmem:[%s1462_s5 + $0x8] sm:$0xff]  ;;  %v202_v45 = vld [vmem:[%s1462_s5] sm:$0xff]  ;;  %v241_v46 = vld [vmem:[%s1462_s5 + $0x138] sm:$0xff]  ;;  %v116_v24 = vshrl.u32 %v115_v23, 7 }
  0x30   :  { %269 = vmatprep.subr.mxu1 %v221_v26  ;;  %v240_v47 = vld [vmem:[%s1462_s5 + $0x130] sm:$0xff]  ;;  %v239_v48 = vld [vmem:[%s1462_s5 + $0x128] sm:$0xff]  ;;  %v238_v49 = vld [vmem:[%s1462_s5 + $0x120] sm:$0xff] }
  0x31   :  { %270 = vmatpush1.msra.mxu1 %v220_v27  ;;  %v237_v50 = vld [vmem:[%s1462_s5 + $0x118] sm:$0xff]  ;;  %v236_v51 = vld [vmem:[%s1462_s5 + $0x110] sm:$0xff]  ;;  %v235_v52 = vld [vmem:[%s1462_s5 + $0x108] sm:$0xff]  ;;  %v1248_v25 = vsub.s32 0, %v116_v24  ;;  %v1253_v27 = vsub.s32 1, %v116_v24 }
  0x32   :  { %271 = vmatprep.subr.mxu1 %v219_v28  ;;  %v234_v53 = vld [vmem:[%s1462_s5 + $0x100] sm:$0xff]  ;;  %v361_v54 = vld [vmem:[#allocation2 + $0xf8] sm:$0xff]  ;;  %v360_v55 = vld [vmem:[#allocation2 + $0xf0] sm:$0xff] }
  0x33   :  { %272 = vmatpush1.msra.mxu1 %v218_v29  ;;  %v359_v56 = vld [vmem:[#allocation2 + $0xe8] sm:$0xff]  ;;  %385 = vmatprep.subr.mxu0 %v361_v54  ;;  %v358_v57 = vld [vmem:[#allocation2 + $0xe0] sm:$0xff]  ;;  %v357_v58 = vld [vmem:[#allocation2 + $0xd8] sm:$0xff] }
  0x34   :  { %273 = vmatprep.subr.mxu1 %v217_v30  ;;  %386 = vmatpush1.msra.mxu0 %v360_v55  ;;  %v356_v59 = vld [vmem:[#allocation2 + $0xd0] sm:$0xff]  ;;  %v355_v60 = vld [vmem:[#allocation2 + $0xc8] sm:$0xff]  ;;  %v354_v61 = vld [vmem:[#allocation2 + $0xc0] sm:$0xff] }
  0x35   :  { %274 = vmatpush1.msra.mxu1 %v216_v31  ;;  %387 = vmatprep.subr.mxu0 %v359_v56  ;;  %v353_v62 = vld [vmem:[#allocation2 + $0xb8] sm:$0xff]  ;;  %v352_v63 = vld [vmem:[#allocation2 + $0xb0] sm:$0xff]  ;;  %v351_v1 = vld [vmem:[#allocation2 + $0xa8] sm:$0xff] }
  0x36   :  { %275 = vmatprep.subr.mxu1 %v215_v32  ;;  %388 = vmatpush1.msra.mxu0 %v358_v57  ;;  %v350_v2 = vld [vmem:[#allocation2 + $0xa0] sm:$0xff]  ;;  %v349_v3 = vld [vmem:[#allocation2 + $0x98] sm:$0xff]  ;;  %v348_v4 = vld [vmem:[#allocation2 + $0x90] sm:$0xff] }
  0x37   :  { %276 = vmatpush1.msra.mxu1 %v214_v33  ;;  %389 = vmatprep.subr.mxu0 %v357_v58  ;;  %v347_v5 = vld [vmem:[#allocation2 + $0x88] sm:$0xff]  ;;  %v346_v6 = vld [vmem:[#allocation2 + $0x80] sm:$0xff]  ;;  %v345_v7 = vld [vmem:[#allocation2 + $0x78] sm:$0xff] }
  0x38   :  { %277 = vmatprep.subr.mxu1 %v213_v34  ;;  %390 = vmatpush1.msra.mxu0 %v356_v59  ;;  %v344_v8 = vld [vmem:[#allocation2 + $0x70] sm:$0xff]  ;;  %v343_v9 = vld [vmem:[#allocation2 + $0x68] sm:$0xff]  ;;  %v342_v10 = vld [vmem:[#allocation2 + $0x60] sm:$0xff] }
  0x39   :  { %278 = vmatpush1.msra.mxu1 %v212_v35  ;;  %391 = vmatprep.subr.mxu0 %v355_v60  ;;  %v341_v11 = vld [vmem:[#allocation2 + $0x58] sm:$0xff]  ;;  %v340_v12 = vld [vmem:[#allocation2 + $0x50] sm:$0xff]  ;;  %v339_v13 = vld [vmem:[#allocation2 + $0x48] sm:$0xff] }
  0x3a   :  { %279 = vmatprep.subr.mxu1 %v211_v36  ;;  %392 = vmatpush1.msra.mxu0 %v354_v61  ;;  %v338_v14 = vld [vmem:[#allocation2 + $0x40] sm:$0xff]  ;;  %v337_v15 = vld [vmem:[#allocation2 + $0x38] sm:$0xff]  ;;  %v336_v16 = vld [vmem:[#allocation2 + $0x30] sm:$0xff] }
  0x3b   :  { %280 = vmatpush1.msra.mxu1 %v210_v37  ;;  %393 = vmatprep.subr.mxu0 %v353_v62  ;;  %v335_v17 = vld [vmem:[#allocation2 + $0x28] sm:$0xff]  ;;  %v334_v18 = vld [vmem:[#allocation2 + $0x20] sm:$0xff]  ;;  %v333_v19 = vld [vmem:[#allocation2 + $0x18] sm:$0xff] }
  0x3c   :  { %281 = vmatprep.subr.mxu1 %v209_v38  ;;  %394 = vmatpush1.msra.mxu0 %v352_v63  ;;  %v332_v20 = vld [vmem:[#allocation2 + $0x10] sm:$0xff]  ;;  %v331_v21 = vld [vmem:[#allocation2 + $0x8] sm:$0xff]  ;;  %v330_v22 = vld [vmem:[#allocation2] sm:$0xff] }
  0x3d   :  { %282 = vmatpush1.msra.mxu1 %v208_v39  ;;  %395 = vmatprep.subr.mxu0 %v351_v1  ;;  %v113_v26 = vld [vmem:[%s1461_s4] sm:$0x3]  ;;  %v369_v36 = vld [vmem:[#allocation2 + $0x138] sm:$0xff]  ;;  %v368_v37 = vld [vmem:[#allocation2 + $0x130] sm:$0xff]  ;;  %s990_s4 = smov [#allocation7]  }
  0x3e   :  { %283 = vmatprep.subr.mxu1 %v207_v40  ;;  %396 = vmatpush1.msra.mxu0 %v350_v2  ;;  %v118_v28 = vrot.slane %v113_v26, %v1248_v25  ;;  %v122_v29 = vrot.slane %v113_v26, %v1253_v27  ;;  %v367_v38 = vld [vmem:[#allocation2 + $0x128] sm:$0xff]  ;;  %v366_v39 = vld [vmem:[#allocation2 + $0x120] sm:$0xff]  ;;  %v365_v40 = vld [vmem:[#allocation2 + $0x118] sm:$0xff]  ;;  %s846_s7 = sshll.u32 %s990_s4, 4  ;;  %s847_s7 = int_to_ptr.vmem [resolvable:$true] %s846_s7 }
  0x3f   :  { %284 = vmatpush1.msra.mxu1 %v206_v41  ;;  %397 = vmatprep.subr.mxu0 %v349_v3  ;;  %v364_v41 = vld [vmem:[#allocation2 + $0x110] sm:$0xff]  ;;  %v479_v54 = vld [vmem:[#allocation5 + $0xa8] sm:$0xff]  ;;  %v478_v55 = vld [vmem:[#allocation5 + $0xa0] sm:$0xff]  ;;  %p942_p11 = scmp.lt.s32.totalorder %s847_s7, %s847_s7 }
  0x40   :  { %285 = vmatprep.subr.mxu1 %v205_v42  ;;  %398 = vmatpush1.msra.mxu0 %v348_v4  ;;  %v363_v42 = vld [vmem:[#allocation2 + $0x108] sm:$0xff]  ;;  %v477_v56 = vld [vmem:[#allocation5 + $0x98] sm:$0xff]  ;;  %v476_v57 = vld [vmem:[#allocation5 + $0x90] sm:$0xff] }
  0x41   :  { %286 = vmatpush1.msra.mxu1 %v204_v43  ;;  %399 = vmatprep.subr.mxu0 %v347_v5  ;;  %v362_v43 = vld [vmem:[#allocation2 + $0x100] sm:$0xff]  ;;  %v475_v58 = vld [vmem:[#allocation5 + $0x88] sm:$0xff]  ;;  %v473_v60 = vld [vmem:[#allocation5 + $0x78] sm:$0xff] }
  0x42   :  { %287 = vmatprep.subr.mxu1 %v203_v44  ;;  %400 = vmatpush1.msra.mxu0 %v346_v6  ;;  %v489_v44 = vld [vmem:[#allocation5 + $0xf8] sm:$0xff]  ;;  %v474_v59 = vld [vmem:[#allocation5 + $0x80] sm:$0xff]  ;;  %v472_v61 = vld [vmem:[#allocation5 + $0x70] sm:$0xff] }
  0x43   :  { %288 = vmatpush1.msra.mxu1 %v202_v45  ;;  %401 = vmatprep.subr.mxu0 %v345_v7  ;;  %v488_v45 = vld [vmem:[#allocation5 + $0xf0] sm:$0xff]  ;;  %v471_v62 = vld [vmem:[#allocation5 + $0x68] sm:$0xff]  ;;  %v470_v63 = vld [vmem:[#allocation5 + $0x60] sm:$0xff] }
  0x44   :  { %313 = vmatprep.subr.mxu1 %v241_v46  ;;  %402 = vmatpush1.msra.mxu0 %v344_v8  ;;  %v487_v46 = vld [vmem:[#allocation5 + $0xe8] sm:$0xff]  ;;  %v469_v1 = vld [vmem:[#allocation5 + $0x58] sm:$0xff]  ;;  %v468_v2 = vld [vmem:[#allocation5 + $0x50] sm:$0xff] }
  0x45   :  { %314 = vmatpush2.msra.mxu1 %v240_v47  ;;  %403 = vmatprep.subr.mxu0 %v343_v9  ;;  %v486_v47 = vld [vmem:[#allocation5 + $0xe0] sm:$0xff]  ;;  %v467_v3 = vld [vmem:[#allocation5 + $0x48] sm:$0xff]  ;;  %v465_v5 = vld [vmem:[#allocation5 + $0x38] sm:$0xff] }
  0x46   :  { %315 = vmatprep.subr.mxu1 %v239_v48  ;;  %404 = vmatpush1.msra.mxu0 %v342_v10  ;;  %v485_v48 = vld [vmem:[#allocation5 + $0xd8] sm:$0xff]  ;;  %v466_v4 = vld [vmem:[#allocation5 + $0x40] sm:$0xff]  ;;  %v464_v6 = vld [vmem:[#allocation5 + $0x30] sm:$0xff] }
  0x47   :  { %316 = vmatpush2.msra.mxu1 %v238_v49  ;;  %405 = vmatprep.subr.mxu0 %v341_v11  ;;  %v484_v49 = vld [vmem:[#allocation5 + $0xd0] sm:$0xff]  ;;  %v463_v7 = vld [vmem:[#allocation5 + $0x28] sm:$0xff]  ;;  %v462_v8 = vld [vmem:[#allocation5 + $0x20] sm:$0xff] }
  0x48   :  { %317 = vmatprep.subr.mxu1 %v237_v50  ;;  %406 = vmatpush1.msra.mxu0 %v340_v12  ;;  %v483_v50 = vld [vmem:[#allocation5 + $0xc8] sm:$0xff]  ;;  %v461_v9 = vld [vmem:[#allocation5 + $0x18] sm:$0xff]  ;;  %v460_v10 = vld [vmem:[#allocation5 + $0x10] sm:$0xff] }
  0x49   :  { %318 = vmatpush2.msra.mxu1 %v236_v51  ;;  %407 = vmatprep.subr.mxu0 %v339_v13  ;;  %v482_v51 = vld [vmem:[#allocation5 + $0xc0] sm:$0xff]  ;;  %v459_v11 = vld [vmem:[#allocation5 + $0x8] sm:$0xff]  ;;  %v496_v23 = vld [vmem:[#allocation5 + $0x130] sm:$0xff] }
  0x4a   :  { %319 = vmatprep.subr.mxu1 %v235_v52  ;;  %408 = vmatpush1.msra.mxu0 %v338_v14  ;;  %v481_v52 = vld [vmem:[#allocation5 + $0xb8] sm:$0xff]  ;;  %v458_v12 = vld [vmem:[#allocation5] sm:$0xff]  ;;  %v495_v24 = vld [vmem:[#allocation5 + $0x128] sm:$0xff] }
  0x4b   :  { %320 = vmatpush2.msra.mxu1 %v234_v53  ;;  %409 = vmatprep.subr.mxu0 %v337_v15  ;;  %v480_v53 = vld [vmem:[#allocation5 + $0xb0] sm:$0xff]  ;;  %v242_v13 = vld [vmem:[%s1463_s6] sm:$0x3] }
  0x4c   :  { %410 = vmatpush1.msra.mxu0 %v336_v16  ;;  %513 = vmatprep.subr.mxu1 %v489_v44  ;;  %v247_v14 = vrot.slane %v242_v13, %v1248_v25  ;;  %v251_v15 = vrot.slane %v242_v13, %v1253_v27  ;;  %v494_v26 = vld [vmem:[#allocation5 + $0x120] sm:$0xff]  ;;  %v589_v44 = vld [vmem:[%s1468_s11 + $0x18] sm:$0xff]  ;;  %v704_v13 = vld [vmem:[%s1470_s13 + $0x90] sm:$0xff] }
  0x4d   :  { %411 = vmatprep.subr.mxu0 %v335_v17 }
  0x4e   :  { %412 = vmatpush1.msra.mxu0 %v334_v18 }
  0x4f   :  { %413 = vmatprep.subr.mxu0 %v333_v19 }
  0x50   :  { %414 = vmatpush1.msra.mxu0 %v332_v20 }
  0x51   :  { %415 = vmatprep.subr.mxu0 %v331_v21 }
  0x52   :  { %416 = vmatpush1.msra.mxu0 %v330_v22  ;;  %v497_v22 = vld [vmem:[#allocation5 + $0x138] sm:$0xff] }
  0x53   :  { %441 = vmatprep.subr.mxu0 %v369_v36  ;;  %v597_v36 = vld [vmem:[%s1468_s11 + $0x58] sm:$0xff] }
  0x54   :  { %442 = vmatpush2.msra.mxu0 %v368_v37  ;;  %v596_v37 = vld [vmem:[%s1468_s11 + $0x50] sm:$0xff] }
  0x55   :  { %443 = vmatprep.subr.mxu0 %v367_v38  ;;  %v595_v38 = vld [vmem:[%s1468_s11 + $0x48] sm:$0xff] }
  0x56   :  { %444 = vmatpush2.msra.mxu0 %v366_v39  ;;  %v594_v39 = vld [vmem:[%s1468_s11 + $0x40] sm:$0xff] }
  0x57   :  { %445 = vmatprep.subr.mxu0 %v365_v40  ;;  %v593_v40 = vld [vmem:[%s1468_s11 + $0x38] sm:$0xff] }
  0x58   :  { %446 = vmatpush2.msra.mxu0 %v364_v41  ;;  %v592_v41 = vld [vmem:[%s1468_s11 + $0x30] sm:$0xff] }
  0x59   :  { %447 = vmatprep.subr.mxu0 %v363_v42  ;;  %v591_v42 = vld [vmem:[%s1468_s11 + $0x28] sm:$0xff] }
  0x5a   :  { %448 = vmatpush2.msra.mxu0 %v362_v43  ;;  %v590_v43 = vld [vmem:[%s1468_s11 + $0x20] sm:$0xff] }
  0x5b   :  { %616 = vmatprep.subr.mxu0 %v989_v0 }
  0xed   :  { %v195_v30 = vpop.f32.mrf.mxu0 }
  0xee   :  { %v196_v31 = vadd.f32 %v195_v30, %v118_v28  ;;  %v493_v28 = vld [vmem:[#allocation5 + $0x118] sm:$0xff]  ;;  %v491_v30 = vld [vmem:[#allocation5 + $0x108] sm:$0xff] }
  0xef   :  { %v197_v32 = vpop.f32.mrf.mxu0 }
  0xf0   :  { %v198_v33 = vadd.f32 %v197_v32, %v122_v29  ;;  %v200_v35 = vmax.f32 %v196_v31, 0.0  ;;  %v492_v29 = vld [vmem:[#allocation5 + $0x110] sm:$0xff]  ;;  %v490_v31 = vld [vmem:[#allocation5 + $0x100] sm:$0xff]  ;;  %v601_v32 = vld [vmem:[%s1468_s11 + $0x78] sm:$0xff] }
  0xf2   :  { %v201_v34 = vmax.f32 %v198_v33, 0.0  ;;  %v600_v33 = vld [vmem:[%s1468_s11 + $0x70] sm:$0xff] }
  0xf4   :  { %873 = vmatprep.mubr.msk.f32.mxu1 %vm125_vm0, %v201_v34  ;;  %v599_v34 = vld [vmem:[%s1468_s11 + $0x68] sm:$0xff] }
  0xf5   :  { %322 = vmatmul.mubr.f32.vlgmr.msra.gmra.mxu1 %v200_v35  ;;  %v598_v35 = vld [vmem:[%s1468_s11 + $0x60] sm:$0xff] }
  0xf6   :  { %514 = vmatpush1.msra.mxu1 %v488_v45  ;;  %v588_v45 = vld [vmem:[%s1468_s11 + $0x10] sm:$0xff] }
  0xf7   :  { %515 = vmatprep.subr.mxu1 %v487_v46  ;;  %v587_v46 = vld [vmem:[%s1468_s11 + $0x8] sm:$0xff] }
  0xf8   :  { %516 = vmatpush1.msra.mxu1 %v486_v47  ;;  %v586_v47 = vld [vmem:[%s1468_s11] sm:$0xff] }
  0xf9   :  { %517 = vmatprep.subr.mxu1 %v485_v48  ;;  %v370_v48 = vld [vmem:[%s1465_s8] sm:$0x3] }
  0xfa   :  { %518 = vmatpush1.msra.mxu1 %v484_v49  ;;  %v375_v49 = vrot.slane %v370_v48, %v1248_v25 }
  0xfb   :  { %519 = vmatprep.subr.mxu1 %v483_v50  ;;  %v379_v50 = vrot.slane %v370_v48, %v1253_v27 }
  0xfc   :  { %520 = vmatpush1.msra.mxu1 %v482_v51 }
  0xfd   :  { %521 = vmatprep.subr.mxu1 %v481_v52 }
  0xfe   :  { %522 = vmatpush1.msra.mxu1 %v480_v53 }
  0xff   :  { %523 = vmatprep.subr.mxu1 %v479_v54 }
 0x100   :  { %524 = vmatpush1.msra.mxu1 %v478_v55 }
 0x101   :  { %525 = vmatprep.subr.mxu1 %v477_v56 }
 0x102   :  { %526 = vmatpush1.msra.mxu1 %v476_v57  ;;  %v701_v57 = vld [vmem:[%s1470_s13 + $0x78] sm:$0xff] }
 0x103   :  { %527 = vmatprep.subr.mxu1 %v475_v58  ;;  %v700_v58 = vld [vmem:[%s1470_s13 + $0x70] sm:$0xff] }
 0x104   :  { %528 = vmatpush1.msra.mxu1 %v474_v59  ;;  %v699_v59 = vld [vmem:[%s1470_s13 + $0x68] sm:$0xff] }
 0x105   :  { %529 = vmatprep.subr.mxu1 %v473_v60  ;;  %v698_v60 = vld [vmem:[%s1470_s13 + $0x60] sm:$0xff] }
 0x106   :  { %530 = vmatpush1.msra.mxu1 %v472_v61  ;;  %v697_v61 = vld [vmem:[%s1470_s13 + $0x58] sm:$0xff] }
 0x107   :  { %531 = vmatprep.subr.mxu1 %v471_v62  ;;  %v696_v62 = vld [vmem:[%s1470_s13 + $0x50] sm:$0xff] }
 0x108   :  { %532 = vmatpush1.msra.mxu1 %v470_v63  ;;  %v695_v63 = vld [vmem:[%s1470_s13 + $0x48] sm:$0xff] }
 0x109   :  { %533 = vmatprep.subr.mxu1 %v469_v1  ;;  %v694_v1 = vld [vmem:[%s1470_s13 + $0x40] sm:$0xff] }
 0x10a   :  { %534 = vmatpush1.msra.mxu1 %v468_v2  ;;  %v693_v2 = vld [vmem:[%s1470_s13 + $0x38] sm:$0xff] }
 0x10b   :  { %535 = vmatprep.subr.mxu1 %v467_v3  ;;  %v692_v3 = vld [vmem:[%s1470_s13 + $0x30] sm:$0xff] }
 0x10c   :  { %536 = vmatpush1.msra.mxu1 %v466_v4  ;;  %v691_v4 = vld [vmem:[%s1470_s13 + $0x28] sm:$0xff] }
 0x10d   :  { %537 = vmatprep.subr.mxu1 %v465_v5  ;;  %v690_v5 = vld [vmem:[%s1470_s13 + $0x20] sm:$0xff] }
 0x10e   :  { %538 = vmatpush1.msra.mxu1 %v464_v6  ;;  %v689_v6 = vld [vmem:[%s1470_s13 + $0x18] sm:$0xff] }
 0x10f   :  { %539 = vmatprep.subr.mxu1 %v463_v7  ;;  %v688_v7 = vld [vmem:[%s1470_s13 + $0x10] sm:$0xff] }
 0x110   :  { %540 = vmatpush1.msra.mxu1 %v462_v8  ;;  %v687_v8 = vld [vmem:[%s1470_s13 + $0x8] sm:$0xff] }
 0x111   :  { %541 = vmatprep.subr.mxu1 %v461_v9  ;;  %v686_v9 = vld [vmem:[%s1470_s13] sm:$0xff] }
 0x112   :  { %542 = vmatpush1.msra.mxu1 %v460_v10  ;;  %v605_v10 = vld [vmem:[%s1468_s11 + $0x98] sm:$0xff] }
 0x113   :  { %543 = vmatprep.subr.mxu1 %v459_v11  ;;  %v705_v11 = vld [vmem:[%s1470_s13 + $0x98] sm:$0xff] }
 0x114   :  { %544 = vmatpush1.msra.mxu1 %v458_v12  ;;  %v604_v12 = vld [vmem:[%s1468_s11 + $0x90] sm:$0xff] }
 0x115   :  { %569 = vmatprep.subr.mxu1 %v497_v22 }
 0x116   :  { %570 = vmatpush2.msra.mxu1 %v496_v23 }
 0x117   :  { %571 = vmatprep.subr.mxu1 %v495_v24 }
 0x118   :  { %572 = vmatpush2.msra.mxu1 %v494_v26 }
 0x119   :  { %573 = vmatprep.subr.mxu1 %v493_v28  ;;  %v876_v28 = vld [vmem:[%s1469_s12] ss:$0 sm:$0xff]  ;;  %s937_s12 = scalar_lea.vmem %s847_s7, 128 }
 0x11a   :  { %574 = vmatpush2.msra.mxu1 %v492_v29  ;;  %p938_p10 = scmp.ne.s32.totalorder %s847_s7, %s937_s12  ;;  %p943_p12 = scmp.lt.s32.totalorder %s937_s12, %s937_s12 }
 0x11b   :  { %575 = vmatprep.subr.mxu1 %v491_v30  ;;  %v880_v30 = vld [vmem:[%s1472_s15] ss:$0 sm:$0xff] }
 0x11c   :  { %576 = vmatpush2.msra.mxu1 %v490_v31  ;;  %p944_p13 = por %p943_p12, %p942_p11 }
 0x11d   :  { %713 = vmatprep.subr.mxu1 %v989_v0 }
 0x11e   :  { %p945_p0 = pnand %p944_p13, %p938_p10 }
 0x1b5   :  { %v323_v16 = vpop.f32.mrf.mxu1 }
 0x1b6   :  { %v324_v17 = vadd.f32 %v323_v16, %v247_v14  ;;  %v603_v14 = vld [vmem:[%s1468_s11 + $0x88] sm:$0xff]  ;;  %v602_v16 = vld [vmem:[%s1468_s11 + $0x80] sm:$0xff] }
 0x1b7   :  { %v325_v18 = vpop.f32.mrf.mxu1 }
 0x1b8   :  { %v326_v19 = vadd.f32 %v325_v18, %v251_v15  ;;  %v328_v21 = vmax.f32 %v324_v17, 0.0  ;;  %v703_v15 = vld [vmem:[%s1470_s13 + $0x88] sm:$0xff]  ;;  %v702_v17 = vld [vmem:[%s1470_s13 + $0x80] sm:$0xff] }
 0x1b9   :  { %v498_v18 = vld [vmem:[%s1467_s10] sm:$0x3] }
 0x1ba   :  { %v329_v20 = vmax.f32 %v326_v19, 0.0  ;;  %v503_v19 = vrot.slane %v498_v18, %v1248_v25  ;;  %v878_v25 = vld [vmem:[%s1471_s14] ss:$0 sm:$0xff] }
 0x1bc   :  { %874 = vmatprep.mubr.msk.f32.mxu0 %vm125_vm0, %v329_v20  ;;  %v507_v20 = vrot.slane %v498_v18, %v1253_v27 }
 0x1bd   :  { %450 = vmatmul.mubr.f32.vlgmr.msra.gmra.mxu0 %v328_v21 }
 0x1be   :  { %617 = vmatpush1.msra.mxu0 %v601_v32 }
 0x1bf   :  { %618 = vmatprep.subr.mxu0 %v989_v0 }
 0x1c0   :  { %619 = vmatpush1.msra.mxu0 %v600_v33 }
 0x1c1   :  { %620 = vmatprep.subr.mxu0 %v989_v0 }
 0x1c2   :  { %621 = vmatpush1.msra.mxu0 %v599_v34 }
 0x1c3   :  { %622 = vmatprep.subr.mxu0 %v989_v0 }
 0x1c4   :  { %623 = vmatpush1.msra.mxu0 %v598_v35 }
 0x1c5   :  { %624 = vmatprep.subr.mxu0 %v989_v0 }
 0x1c6   :  { %625 = vmatpush1.msra.mxu0 %v597_v36 }
 0x1c7   :  { %626 = vmatprep.subr.mxu0 %v989_v0 }
 0x1c8   :  { %627 = vmatpush1.msra.mxu0 %v596_v37 }
 0x1c9   :  { %628 = vmatprep.subr.mxu0 %v989_v0 }
 0x1ca   :  { %629 = vmatpush1.msra.mxu0 %v595_v38 }
 0x1cb   :  { %630 = vmatprep.subr.mxu0 %v989_v0 }
 0x1cc   :  { %631 = vmatpush1.msra.mxu0 %v594_v39 }
 0x1cd   :  { %632 = vmatprep.subr.mxu0 %v989_v0 }
 0x1ce   :  { %633 = vmatpush1.msra.mxu0 %v593_v40 }
 0x1cf   :  { %634 = vmatprep.subr.mxu0 %v989_v0 }
 0x1d0   :  { %635 = vmatpush1.msra.mxu0 %v592_v41 }
 0x1d1   :  { %636 = vmatprep.subr.mxu0 %v989_v0 }
 0x1d2   :  { %637 = vmatpush1.msra.mxu0 %v591_v42 }
 0x1d3   :  { %638 = vmatprep.subr.mxu0 %v989_v0 }
 0x1d4   :  { %639 = vmatpush1.msra.mxu0 %v590_v43 }
 0x1d5   :  { %640 = vmatprep.subr.mxu0 %v989_v0 }
 0x1d6   :  { %641 = vmatpush1.msra.mxu0 %v589_v44 }
 0x1d7   :  { %642 = vmatprep.subr.mxu0 %v989_v0 }
 0x1d8   :  { %643 = vmatpush1.msra.mxu0 %v588_v45 }
 0x1d9   :  { %644 = vmatprep.subr.mxu0 %v989_v0 }
 0x1da   :  { %645 = vmatpush1.msra.mxu0 %v587_v46 }
 0x1db   :  { %646 = vmatprep.subr.mxu0 %v989_v0 }
 0x1dc   :  { %647 = vmatpush1.msra.mxu0 %v586_v47 }
 0x1dd   :  { %672 = vmatprep.subr.mxu0 %v989_v0 }
 0x1de   :  { %673 = vmatpush2.msra.mxu0 %v605_v10 }
 0x1df   :  { %674 = vmatprep.subr.mxu0 %v989_v0 }
 0x1e0   :  { %675 = vmatpush2.msra.mxu0 %v604_v12 }
 0x1e1   :  { %676 = vmatprep.subr.mxu0 %v989_v0 }
 0x1e2   :  { %677 = vmatpush2.msra.mxu0 %v603_v14 }
 0x1e3   :  { %678 = vmatprep.subr.mxu0 %v989_v0 }
 0x1e4   :  { %679 = vmatpush2.msra.mxu0 %v602_v16 }
 0x27d   :  { %v451_v51 = vpop.f32.mrf.mxu0 }
 0x27e   :  { %v452_v52 = vadd.f32 %v451_v51, %v375_v49 }
 0x27f   :  { %v453_v53 = vpop.f32.mrf.mxu0 }
 0x280   :  { %v454_v54 = vadd.f32 %v453_v53, %v379_v50  ;;  %v456_v56 = vmax.f32 %v452_v52, 0.0 }
 0x282   :  { %v457_v55 = vmax.f32 %v454_v54, 0.0 }
 0x284   :  { %875 = vmatprep.mubr.msk.f32.mxu1 %vm125_vm0, %v457_v55 }
 0x285   :  { %578 = vmatmul.mubr.f32.vlgmr.msra.gmra.mxu1 %v456_v56 }
 0x286   :  { %714 = vmatpush1.msra.mxu1 %v701_v57 }
 0x287   :  { %715 = vmatprep.subr.mxu1 %v989_v0 }
 0x288   :  { %716 = vmatpush1.msra.mxu1 %v700_v58 }
 0x289   :  { %717 = vmatprep.subr.mxu1 %v989_v0 }
 0x28a   :  { %718 = vmatpush1.msra.mxu1 %v699_v59 }
 0x28b   :  { %719 = vmatprep.subr.mxu1 %v989_v0 }
 0x28c   :  { %720 = vmatpush1.msra.mxu1 %v698_v60 }
 0x28d   :  { %721 = vmatprep.subr.mxu1 %v989_v0 }
 0x28e   :  { %722 = vmatpush1.msra.mxu1 %v697_v61 }
 0x28f   :  { %723 = vmatprep.subr.mxu1 %v989_v0 }
 0x290   :  { %724 = vmatpush1.msra.mxu1 %v696_v62 }
 0x291   :  { %725 = vmatprep.subr.mxu1 %v989_v0 }
 0x292   :  { %726 = vmatpush1.msra.mxu1 %v695_v63 }
 0x293   :  { %727 = vmatprep.subr.mxu1 %v989_v0 }
 0x294   :  { %728 = vmatpush1.msra.mxu1 %v694_v1 }
 0x295   :  { %729 = vmatprep.subr.mxu1 %v989_v0 }
 0x296   :  { %730 = vmatpush1.msra.mxu1 %v693_v2 }
 0x297   :  { %731 = vmatprep.subr.mxu1 %v989_v0 }
 0x298   :  { %732 = vmatpush1.msra.mxu1 %v692_v3 }
 0x299   :  { %733 = vmatprep.subr.mxu1 %v989_v0 }
 0x29a   :  { %734 = vmatpush1.msra.mxu1 %v691_v4 }
 0x29b   :  { %735 = vmatprep.subr.mxu1 %v989_v0 }
 0x29c   :  { %736 = vmatpush1.msra.mxu1 %v690_v5 }
 0x29d   :  { %737 = vmatprep.subr.mxu1 %v989_v0 }
 0x29e   :  { %738 = vmatpush1.msra.mxu1 %v689_v6 }
 0x29f   :  { %739 = vmatprep.subr.mxu1 %v989_v0 }
 0x2a0   :  { %740 = vmatpush1.msra.mxu1 %v688_v7 }
 0x2a1   :  { %741 = vmatprep.subr.mxu1 %v989_v0 }
 0x2a2   :  { %742 = vmatpush1.msra.mxu1 %v687_v8 }
 0x2a3   :  { %743 = vmatprep.subr.mxu1 %v989_v0 }
 0x2a4   :  { %744 = vmatpush1.msra.mxu1 %v686_v9 }
 0x2a5   :  { %769 = vmatprep.subr.mxu1 %v989_v0 }
 0x2a6   :  { %770 = vmatpush2.msra.mxu1 %v705_v11 }
 0x2a7   :  { %771 = vmatprep.subr.mxu1 %v989_v0 }
 0x2a8   :  { %772 = vmatpush2.msra.mxu1 %v704_v13 }
 0x2a9   :  { %773 = vmatprep.subr.mxu1 %v989_v0 }
 0x2aa   :  { %774 = vmatpush2.msra.mxu1 %v703_v15 }
 0x2ab   :  { %775 = vmatprep.subr.mxu1 %v989_v0 }
 0x2ac   :  { %776 = vmatpush2.msra.mxu1 %v702_v17 }
 0x345   :  { %v579_v21 = vpop.f32.mrf.mxu1 }
 0x346   :  { %v580_v22 = vadd.f32 %v579_v21, %v503_v19 }
 0x347   :  { %v581_v23 = vpop.f32.mrf.mxu1 }
 0x348   :  { %v582_v24 = vadd.f32 %v581_v23, %v507_v20  ;;  %v584_v0 = vmax.f32 %v580_v22, 0.0 }
 0x34a   :  { %v585_v26 = vmax.f32 %v582_v24, 0.0 }
 0x34c   :  { %877 = vmatprep.mubr.msk.f32.mxu0 %vm125_vm0, %v585_v26  ;;  %879 = vmatprep.mubr.msk.f32.mxu1 %vm125_vm0, %v585_v26 }
 0x34d   :  { %681 = vmatmul.mubr.f32.vlgmr.msra.gmra.mxu0 %v584_v0  ;;  %778 = vmatmul.mubr.f32.vlgmr.msra.gmra.mxu1 %v584_v0 }
 0x40d   :  { %v682_v27 = vpop.f32.mrf.mxu0  ;;  %v779_v29 = vpop.f32.mrf.mxu1 }
 0x40e   :  { %v683_v31 = vadd.f32 %v876_v28, %v682_v27  ;;  %v780_v32 = vadd.f32 %v878_v25, %v779_v29 }
 0x40f   :  { %v684_v33 = vpop.f32.mrf.mxu0  ;;  %v781_v34 = vpop.f32.mrf.mxu1 }
 0x410   :  { %v791_v35 = vsub.f32 %v880_v30, %v780_v32  ;;  %838 = vst.msk [vmem:[#allocation7] sm:$0xff] %vm837_vm1, %v683_v31 }
 0x411   :  { %948 = shalt.err (!%p945_p0)
}
 0x412   :  { %849 = dma.vmem_to_hbm [thread:$0]  %s847_s7, 128, %s1474_s17, [#allocation4]   ;;  %v795_v36 = vand.u32 2147483647, %v791_v35  ;;  %v792_v47 = vmax.f32 %v791_v35, 0.0  ;;  %vm793_vm3 = vcmp.ne.f32.partialorder %v791_v35, %v791_v35 }
 0x413   :  { %v881_v50 = vld [vmem:[%s1473_s16] ss:$0 sm:$0xff]  ;;  %s991_s16 = smov [#allocation8]  }
 0x414   :  { %v796_v37 = vsub.f32 0.0, %v795_v36  ;;  %s856_s26 = sshll.u32 %s991_s16, 4  ;;  %s857_s26 = int_to_ptr.vmem [resolvable:$true] %s856_s26 }
 0x415   :  { %s957_s27 = scalar_lea.vmem %s857_s26, 128  ;;  %p962_p2 = scmp.lt.s32.totalorder %s857_s26, %s857_s26 }
 0x416   :  { %v797_v38 = vmul.f32 1.442695, %v796_v37  ;;  %p958_p1 = scmp.ne.s32.totalorder %s857_s26, %s957_s27  ;;  %p963_p3 = scmp.lt.s32.totalorder %s957_s27, %s957_s27 }
 0x418   :  { %889 = vpow2.f32 %v797_v38  ;;  %p964_p4 = por %p963_p3, %p962_p2 }
 0x41a   :  { %p965_p5 = pnand %p964_p4, %p958_p1 }
 0x425   :  { %v890_v39 = vpop.eup %889 }
 0x426   :  { %v799_v40 = vadd.f32 1.0, %v890_v39  ;;  %v802_v41 = vmul.f32 -0.5, %v890_v39  ;;  %v805_v43 = vand.u32 2147483647, %v890_v39 }
 0x428   :  { %891 = vlog2.f32 %v799_v40  ;;  %v803_v42 = vadd.f32 1.0, %v802_v41  ;;  %vm806_vm2 = vcmp.lt.f32.partialorder %v805_v43, 0.0004427343 }
 0x42a   :  { %v804_v46 = vmul.f32 %v890_v39, %v803_v42 }
 0x435   :  { %v892_v44 = vpop.eup %891 }
 0x436   :  { %v801_v45 = vmul.f32 0.6931472, %v892_v44 }
 0x438   :  { %v807_v48 = vsel %vm806_vm2, %v804_v46, %v801_v45 }
 0x439   :  { %v808_v49 = vadd.f32 %v807_v48, %v792_v47 }
 0x43b   :  { %v809_v51 = vsel %vm793_vm3, %v791_v35, %v808_v49 }
 0x43c   :  { %v810_v52 = vsub.f32 %v880_v30, %v809_v51 }
 0x43e   :  { %v817_v53 = vsub.f32 %v810_v52, %v881_v50 }
 0x440   :  { %v821_v54 = vand.u32 2147483647, %v817_v53  ;;  %v818_v2 = vmax.f32 %v817_v53, 0.0  ;;  %vm819_vm5 = vcmp.ne.f32.partialorder %v817_v53, %v817_v53 }
 0x442   :  { %v822_v55 = vsub.f32 0.0, %v821_v54 }
 0x444   :  { %v823_v56 = vmul.f32 1.442695, %v822_v55 }
 0x446   :  { %893 = vpow2.f32 %v823_v56 }
 0x453   :  { %v894_v57 = vpop.eup %893 }
 0x454   :  { %v825_v58 = vadd.f32 1.0, %v894_v57  ;;  %v828_v59 = vmul.f32 -0.5, %v894_v57  ;;  %v831_v61 = vand.u32 2147483647, %v894_v57 }
 0x456   :  { %895 = vlog2.f32 %v825_v58  ;;  %v829_v60 = vadd.f32 1.0, %v828_v59  ;;  %vm832_vm4 = vcmp.lt.f32.partialorder %v831_v61, 0.0004427343 }
 0x458   :  { %v830_v1 = vmul.f32 %v894_v57, %v829_v60 }
 0x463   :  { %v896_v62 = vpop.eup %895 }
 0x464   :  { %v827_v63 = vmul.f32 0.6931472, %v896_v62 }
 0x466   :  { %v833_v3 = vsel %vm832_vm4, %v830_v1, %v827_v63 }
 0x467   :  { %v834_v4 = vadd.f32 %v833_v3, %v818_v2 }
 0x469   :  { %v835_v5 = vsel %vm819_vm5, %v817_v53, %v834_v4 }
 0x46a   :  { %v836_v6 = vadd.f32 %v881_v50, %v835_v5 }
 0x46c   :  { %839 = vst.msk [vmem:[#allocation8] sm:$0xff] %vm837_vm1, %v836_v6 }
 0x46d   :  { %968 = shalt.err (!%p965_p5)
}
 0x46e   :  { %859 = dma.vmem_to_hbm [thread:$0]  %s857_s26, 128, %s1475_s18, [#allocation9]  }
 0x46f   :  { %981 = dma.done.wait [#allocation4], 128  }
 0x470   :  { %982 = vsyncadd [#allocation4], 4294967168 }
 0x471   :  { %983 = dma.done.wait [#allocation9], 128  }
 0x472   :  { %984 = vsyncadd [#allocation9], 4294967168 }
 0x473   :  { %866 = vsyncpa [#allocation3], 1 }
 0x474   :  { %867 = vsyncpa [#allocation6], 1 }
 0x475   :  { %868 = vsyncpa [#allocation4], 1 }
 0x476   :  { %869 = vsyncpa [#allocation9], 1 }

</bundles_post_ra>
